<compile_context>
chip_gen: v7x
topology: tpu7x:2x2x1
jax: 0.10.0
libtpu: 0.0.40
codegen_flags: <defaults>
</compile_context>

<pallas_src>
import functools

import jax
import jax.numpy as jnp
from jax.experimental import pallas as pl
from jax.experimental.pallas import tpu as pltpu


def _layernorm_kernel(x_ref, w_ref, b_ref, o_ref, *, eps: float, hidden: int):
    # x_ref block: (TR, C); w_ref/b_ref: (1, C); o_ref: (TR, C)
    x = x_ref[...].astype(jnp.float32)                      # (TR, C)
    mean = jnp.mean(x, axis=-1, keepdims=True)              # (TR, 1)
    xc = x - mean
    # torch.Tensor.std() is unbiased: divide by (N - 1).
    var = jnp.sum(xc * xc, axis=-1, keepdims=True) * jnp.float32(1.0 / (hidden - 1))
    std = jnp.sqrt(var)
    inv = 1.0 / (std + jnp.float32(eps))                     # exact (matches torch)
    w = w_ref[...].astype(jnp.float32)                       # (1, C) broadcast
    b = b_ref[...].astype(jnp.float32)
    o_ref[...] = (w * (xc * inv) + b).astype(o_ref.dtype)


def _row_tile(rows: int, cols: int, itemsize: int,
              target_bytes: int = 4 * 1024 * 1024,
              max_rows: int = 4096) -> int:
    """Pick a row-tile so one (TR, C) block is ~4 MiB.

    With double-buffered input + output that is ~16 MiB of VMEM: fits the
    default scoped limit on v6e/v7x and the raised limit we set for v5e,
    while big enough that the ~0.35 us per-grid-step overhead is <10% of the
    HBM time per step even at v7x's 3.2 TB/s.  TR is rounded to the dtype's
    sublane packing (8 for 32-bit, 16 for 16-bit, 32 for 8-bit) so boundary
    blocks keep full packed rows and unmasked stores.
    """
    pack = max(1, 4 // max(1, itemsize))      # rows packed per sublane
    align = 8 * pack                          # 8 f32 / 16 bf16 / 32 int8
    tr = target_bytes // max(1, cols * itemsize)
    tr = max(align, (tr // align) * align)
    tr = min(tr, max_rows)
    if tr >= rows:
        return rows                           # full extent is always legal
    return tr


def custom_layer_norm(x, weight, bias, *, num_particles: int, eps: float = 1e-6):
    """x: [P, B, S, H]; weight, bias: [H].  Returns [P, B, S, H]."""
    P, B, S, H = x.shape
    assert P == num_particles
    assert weight.shape == (H,) and bias.shape == (H,)

    # Flatten particle + batch + seq into one row axis (rows are independent).
    R, C = P * B * S, H
    x2 = x.reshape(R, C)                                   # glue reshape in plain JAX
    w2 = weight.reshape(1, C)
    b2 = bias.reshape(1, C)

    TR = _row_tile(R, C, jnp.dtype(x.dtype).itemsize)
    grid = (pl.cdiv(R, TR),)

    kernel = functools.partial(_layernorm_kernel, eps=float(eps), hidden=C)

    out = pl.pallas_call(
        kernel,
        out_shape=jax.ShapeDtypeStruct((R, C), x.dtype),
        grid_spec=pltpu.PrefetchScalarGridSpec(
            num_scalar_prefetch=0,
            grid=grid,
            in_specs=[
                pl.BlockSpec((TR, C), lambda i: (i, 0)),
                pl.BlockSpec((1, C), lambda i: (0, 0)),    # weight, resident
                pl.BlockSpec((1, C), lambda i: (0, 0)),    # bias, resident
            ],
            out_specs=pl.BlockSpec((TR, C), lambda i: (i, 0)),
        ),
        compiler_params=pltpu.CompilerParams(
            # Single long independent row-tile axis: shard across TensorCores.
            dimension_semantics=("parallel",),
            # ~16 MiB of buffers at 4 MiB blocks; raise past v5e's 16 MiB
            # default scoped limit but stay well inside v7x's 64 MiB physical.
            vmem_limit_bytes=48 << 20,
        ),
    )(x2, w2, b2)

    return out.reshape(P, B, S, H)


def _reference(x, weight, bias, eps):
    # Pure-JAX reference mirroring the torch module (unbiased std).
    mean = jnp.mean(x, axis=-1, keepdims=True)
    std = jnp.std(x, axis=-1, keepdims=True, ddof=1)
    return weight * (x - mean) / (std + eps) + bias


if __name__ == "__main__":
    key = jax.random.PRNGKey(0)
    num_particles, batch, seq, hidden = 3, 2, 8, 128
    eps = 1e-6

    kx, kw, kb = jax.random.split(key, 3)
    x = jax.random.normal(kx, (num_particles, batch, seq, hidden), dtype=jnp.float32)
    # Module initializes weight=1, bias=0; perturb them so the affine part is tested.
    weight = jnp.ones((hidden,), jnp.float32) + 0.1 * jax.random.normal(kw, (hidden,))
    bias = jnp.zeros((hidden,), jnp.float32) + 0.1 * jax.random.normal(kb, (hidden,))

    out = custom_layer_norm(x, weight, bias, num_particles=num_particles, eps=eps)
    out = jax.block_until_ready(out)

    assert out.shape == (num_particles, batch, seq, hidden)
    ref = _reference(x, weight, bias, eps)
    for i in range(num_particles):
        assert jnp.allclose(out[i], ref[i], rtol=1e-5, atol=1e-5), (
            f"particle {i}: max err {float(jnp.max(jnp.abs(out[i] - ref[i])))}")

    print("KERNEL_OK")
</pallas_src>

<mosaic_0001>
module attributes {stable_mosaic.version = 11 : i64} {
  func.func @_layernorm_kernel(%arg0: i32, %arg1: memref<48x128xf32, #tpu.memory_space<vmem>>, %arg2: memref<1x128xf32, #tpu.memory_space<vmem>>, %arg3: memref<1x128xf32, #tpu.memory_space<vmem>>, %arg4: memref<48x128xf32, #tpu.memory_space<vmem>>) attributes {dimension_semantics = [#tpu.dimension_semantics<parallel>], iteration_bounds = array<i64: 1>, scalar_prefetch = 0 : i64, scratch_operands = 0 : i64, tpu.core_type = #tpu.core_type<tc>, window_params = [{transform_indices = @transform_0, window_bounds = array<i64: 48, 128>}, {pipeline_mode = #tpu.pipeline_mode<synchronous>, transform_indices = @transform_1, window_bounds = array<i64: 1, 128>}, {pipeline_mode = #tpu.pipeline_mode<synchronous>, transform_indices = @transform_2, window_bounds = array<i64: 1, 128>}, {transform_indices = @transform_3, window_bounds = array<i64: 48, 128>}]} {
    %c0 = arith.constant 0 : index
    %c0_0 = arith.constant 0 : index
    %0 = vector.load %arg1[%c0, %c0_0] : memref<48x128xf32, #tpu.memory_space<vmem>>, vector<48x128xf32>
    %cst = arith.constant dense<0.000000e+00> : vector<48xf32>
    %1 = vector.multi_reduction <add>, %0, %cst [1] : vector<48x128xf32> to vector<48xf32>
    %2 = vector.shape_cast %1 : vector<48xf32> to vector<48x1xf32>
    %cst_1 = arith.constant 1.280000e+02 : f32
    %3 = vector.broadcast %cst_1 : f32 to vector<48x1xf32>
    %4 = arith.divf %2, %3 : vector<48x1xf32>
    %5 = vector.broadcast %4 : vector<48x1xf32> to vector<48x128xf32>
    %6 = arith.subf %0, %5 : vector<48x128xf32>
    %7 = arith.mulf %6, %6 : vector<48x128xf32>
    %cst_2 = arith.constant dense<0.000000e+00> : vector<48xf32>
    %8 = vector.multi_reduction <add>, %7, %cst_2 [1] : vector<48x128xf32> to vector<48xf32>
    %9 = vector.shape_cast %8 : vector<48xf32> to vector<48x1xf32>
    %cst_3 = arith.constant 0.00787401571 : f32
    %10 = vector.broadcast %cst_3 : f32 to vector<48x1xf32>
    %11 = arith.mulf %9, %10 : vector<48x1xf32>
    %12 = math.sqrt %11 : vector<48x1xf32>
    %cst_4 = arith.constant 9.99999997E-7 : f32
    %13 = vector.broadcast %cst_4 : f32 to vector<48x1xf32>
    %14 = arith.addf %12, %13 : vector<48x1xf32>
    %cst_5 = arith.constant 1.000000e+00 : f32
    %15 = vector.broadcast %cst_5 : f32 to vector<48x1xf32>
    %16 = arith.divf %15, %14 : vector<48x1xf32>
    %c0_6 = arith.constant 0 : index
    %c0_7 = arith.constant 0 : index
    %17 = vector.load %arg2[%c0_6, %c0_7] : memref<1x128xf32, #tpu.memory_space<vmem>>, vector<1x128xf32>
    %c0_8 = arith.constant 0 : index
    %c0_9 = arith.constant 0 : index
    %18 = vector.load %arg3[%c0_8, %c0_9] : memref<1x128xf32, #tpu.memory_space<vmem>>, vector<1x128xf32>
    %19 = vector.broadcast %16 : vector<48x1xf32> to vector<48x128xf32>
    %20 = arith.mulf %6, %19 : vector<48x128xf32>
    %21 = vector.broadcast %17 : vector<1x128xf32> to vector<48x128xf32>
    %22 = arith.mulf %21, %20 : vector<48x128xf32>
    %23 = vector.broadcast %18 : vector<1x128xf32> to vector<48x128xf32>
    %24 = arith.addf %22, %23 : vector<48x128xf32>
    %c0_10 = arith.constant 0 : index
    %c0_11 = arith.constant 0 : index
    %25 = vector.load %arg4[%c0_10, %c0_11] : memref<48x128xf32, #tpu.memory_space<vmem>>, vector<48x128xf32>
    tpu.vector_store %arg4[%c0_10, %c0_11], %24 {strides = array<i32>} : memref<48x128xf32, #tpu.memory_space<vmem>>, vector<48x128xf32>,
    return
  }
  func.func @transform_0(%arg0: i32) -> (i32, i32) {
    %c0_i32 = arith.constant 0 : i32
    %c0_i32_0 = arith.constant 0 : i32
    return %arg0, %c0_i32 : i32, i32
  }
  func.func @transform_1(%arg0: i32) -> (i32, i32) {
    %c0_i32 = arith.constant 0 : i32
    %c0_i32_0 = arith.constant 0 : i32
    %c0_i32_1 = arith.constant 0 : i32
    return %c0_i32, %c0_i32_0 : i32, i32
  }
  func.func @transform_2(%arg0: i32) -> (i32, i32) {
    %c0_i32 = arith.constant 0 : i32
    %c0_i32_0 = arith.constant 0 : i32
    %c0_i32_1 = arith.constant 0 : i32
    return %c0_i32, %c0_i32_0 : i32, i32
  }
  func.func @transform_3(%arg0: i32) -> (i32, i32) {
    %c0_i32 = arith.constant 0 : i32
    %c0_i32_0 = arith.constant 0 : i32
    return %arg0, %c0_i32 : i32, i32
  }
}

</mosaic_0001>

<bundles_post_ra>
// kernel: tpu_custom_call.1
= control target key start
LH: loop header
LB: loop body
LE: loop exit
PB: predicated region body
PF: predicated region fallthrough
CT: control target
= control target key end

     0   :  { %8 = vsyncpa [#allocation3], 0  ;;  %s367_s0 = inlined_call_operand.hbm [shape: f32[48,128], index: 0, kind: input, shape index: {}]   ;;  %s368_s1 = inlined_call_operand.vmem [shape: f32[1,128], index: 1, kind: input, shape index: {}]   ;;  %s369_s2 = inlined_call_operand.vmem [shape: f32[1,128], index: 2, kind: input, shape index: {}]   ;;  %s370_s3 = inlined_call_operand.hbm [shape: f32[48,128], index: 3, kind: output, shape index: {}]  }
   0x1   :  { %9 = vsyncpa [#allocation4], 0  ;;  %s277_s12 = smov [#allocation2]   ;;  %s229_s16 = scalar_lea.hbm %s367_s0, 768 }
   0x2   :  { %s15_s13 = sshll.u32 %s277_s12, 4  ;;  %p230_p0 = scmp.ne.s32.totalorder %s367_s0, %s229_s16  ;;  %s16_s13 = int_to_ptr.vmem [resolvable:$true] %s15_s13 }
   0x3   :  { %p233_p1 = scmp.lt.u32.totalorder %s229_s16, %s367_s0 }
   0x5   :  { %p235_p2 = pnand %p233_p1, %p230_p0 }
   0x7   :  { %238 = shalt.err (!%p235_p2)
}
   0x8   :  { %s239_s21 = scalar_lea.vmem %s16_s13, 768  ;;  %p244_p4 = scmp.lt.s32.totalorder %s16_s13, %s16_s13 }
   0x9   :  { %p240_p3 = scmp.ne.s32.totalorder %s16_s13, %s239_s21  ;;  %p245_p5 = scmp.lt.s32.totalorder %s239_s21, %s239_s21 }
   0xb   :  { %p246_p6 = por %p245_p5, %p244_p4 }
   0xd   :  { %p247_p7 = pnand %p246_p6, %p240_p3 }
   0xf   :  { %250 = shalt.err (!%p247_p7)
}
  0x10   :  { %s278_s22 = smov 128   ;;  %s279_s23 = smov 8  }
  0x11   :  { %21 = dma.hbm_to_vmem [thread:$0]  %s367_s0, 768, %s16_s13, [#allocation3], %s278_s22, %s278_s22, %s279_s23  }
  0x12   :  { %273 = dma.done.wait [#allocation3], 768  }
  0x13   :  { %274 = vsyncadd [#allocation3], 4294966528  ;;  %v29_v0 = vld [vmem:[#allocation2] sm:$0xff]  ;;  %v31_v1 = vld [vmem:[#allocation2 + $0x10] sm:$0xff] }
  0x14   :  { %35 = vadd.xlane.f32.xlu0 %v29_v0  ;;  %39 = vadd.xlane.f32.xlu1 %v31_v1  ;;  %v30_v2 = vld [vmem:[#allocation2 + $0x8] sm:$0xff]  ;;  %v32_v3 = vld [vmem:[#allocation2 + $0x18] sm:$0xff]  ;;  %v33_v4 = vld [vmem:[#allocation2 + $0x20] sm:$0xff] }
  0x15   :  { %v34_v5 = vld [vmem:[#allocation2 + $0x28] sm:$0xff] }
  0x18   :  { %37 = vadd.xlane.f32.xlu0 %v30_v2  ;;  %41 = vadd.xlane.f32.xlu1 %v32_v3 }
  0x1c   :  { %43 = vadd.xlane.f32.xlu0 %v33_v4  ;;  %45 = vadd.xlane.f32.xlu1 %v34_v5 }
  0xa1   :  { %v36_v6 = vpop.xlane.xlu0 %35  ;;  %v40_v7 = vpop.xlane.xlu1 %39 }
  0xa2   :  { %v48_v8 = vmul.f32 0.0078125, %v36_v6  ;;  %v50_v9 = vmul.f32 0.0078125, %v40_v7 }
  0xa4   :  { %v316_v10 = vsub.f32 %v29_v0, %v48_v8  ;;  %v318_v11 = vsub.f32 %v31_v1, %v50_v9 }
  0xa5   :  { %v38_v12 = vpop.xlane.xlu0 %37  ;;  %v42_v13 = vpop.xlane.xlu1 %41 }
  0xa6   :  { %v49_v14 = vmul.f32 0.0078125, %v38_v12  ;;  %v60_v15 = vmul.f32 %v316_v10, %v316_v10  ;;  %v51_v16 = vmul.f32 0.0078125, %v42_v13  ;;  %v62_v19 = vmul.f32 %v318_v11, %v318_v11 }
  0xa8   :  { %v322_v17 = vsub.f32 %v30_v2, %v49_v14  ;;  %66 = vadd.xlane.f32.xlu0 %v60_v15  ;;  %v324_v18 = vsub.f32 %v32_v3, %v51_v16 }
  0xa9   :  { %v44_v20 = vpop.xlane.xlu0 %43  ;;  %v46_v21 = vpop.xlane.xlu1 %45 }
  0xaa   :  { %v52_v22 = vmul.f32 0.0078125, %v44_v20  ;;  %v61_v23 = vmul.f32 %v322_v17, %v322_v17  ;;  %v53_v24 = vmul.f32 0.0078125, %v46_v21  ;;  %v63_v27 = vmul.f32 %v324_v18, %v324_v18  ;;  %v200_v21 = vld [vmem:[%s369_s2] ss:$0 sm:$0xff] }
  0xac   :  { %v330_v25 = vsub.f32 %v33_v4, %v52_v22  ;;  %70 = vadd.xlane.f32.xlu0 %v62_v19  ;;  %68 = vadd.xlane.f32.xlu1 %v61_v23  ;;  %v332_v26 = vsub.f32 %v34_v5, %v53_v24  ;;  %v199_v19 = vld [vmem:[%s368_s1] ss:$0 sm:$0xff]  ;;  %s280_s1 = smov [#allocation5]  }
  0xad   :  { %s187_s2 = sshll.u32 %s280_s1, 4  ;;  %s188_s2 = int_to_ptr.vmem [resolvable:$true] %s187_s2 }
  0xae   :  { %v64_v28 = vmul.f32 %v330_v25, %v330_v25  ;;  %v65_v29 = vmul.f32 %v332_v26, %v332_v26  ;;  %s251_s29 = scalar_lea.vmem %s188_s2, 768  ;;  %p256_p9 = scmp.lt.s32.totalorder %s188_s2, %s188_s2 }
  0xaf   :  { %p252_p8 = scmp.ne.s32.totalorder %s188_s2, %s251_s29  ;;  %p257_p10 = scmp.lt.s32.totalorder %s251_s29, %s251_s29 }
  0xb0   :  { %72 = vadd.xlane.f32.xlu1 %v63_v27  ;;  %74 = vadd.xlane.f32.xlu0 %v64_v28 }
  0xb1   :  { %p258_p11 = por %p257_p10, %p256_p9 }
  0xb3   :  { %p259_p12 = pnand %p258_p11, %p252_p8 }
  0xb4   :  { %76 = vadd.xlane.f32.xlu1 %v65_v29 }
 0x135   :  { %v67_v30 = vpop.xlane.xlu0 %66 }
 0x136   :  { %v78_v31 = vmul.f32 0.007874016, %v67_v30 }
 0x138   :  { %205 = vrsqrt.f32 %v78_v31  ;;  %vm86_vm0 = vcmp.eq.f32.partialorder %v78_v31, inf  ;;  %v89_v44 = vand.u32 2147483648, %v78_v31  ;;  %vm88_vm1 = vcmp.eq.f32.partialorder %v78_v31, 0.0 }
 0x139   :  { %v69_v32 = vpop.xlane.xlu1 %68  ;;  %v71_v33 = vpop.xlane.xlu0 %70 }
 0x13a   :  { %v79_v34 = vmul.f32 0.007874016, %v69_v32  ;;  %v80_v35 = vmul.f32 0.007874016, %v71_v33 }
 0x13c   :  { %207 = vrsqrt.f32 %v79_v34  ;;  %vm93_vm2 = vcmp.eq.f32.partialorder %v79_v34, inf  ;;  %vm95_vm3 = vcmp.eq.f32.partialorder %v79_v34, 0.0  ;;  %v96_v51 = vand.u32 2147483648, %v79_v34 }
 0x13d   :  { %209 = vrsqrt.f32 %v80_v35  ;;  %v73_v36 = vpop.xlane.xlu1 %72  ;;  %v75_v37 = vpop.xlane.xlu0 %74  ;;  %vm100_vm4 = vcmp.eq.f32.partialorder %v80_v35, inf  ;;  %v103_v54 = vand.u32 2147483648, %v80_v35  ;;  %vm102_vm5 = vcmp.eq.f32.partialorder %v80_v35, 0.0 }
 0x13e   :  { %v81_v38 = vmul.f32 0.007874016, %v73_v36  ;;  %v82_v39 = vmul.f32 0.007874016, %v75_v37 }
 0x140   :  { %211 = vrsqrt.f32 %v81_v38  ;;  %vm107_vm6 = vcmp.eq.f32.partialorder %v81_v38, inf  ;;  %vm109_vm7 = vcmp.eq.f32.partialorder %v81_v38, 0.0  ;;  %v110_v63 = vand.u32 2147483648, %v81_v38 }
 0x141   :  { %213 = vrsqrt.f32 %v82_v39  ;;  %v77_v40 = vpop.xlane.xlu1 %76  ;;  %vm114_vm8 = vcmp.eq.f32.partialorder %v82_v39, inf  ;;  %v117_v2 = vand.u32 2147483648, %v82_v39  ;;  %vm116_vm9 = vcmp.eq.f32.partialorder %v82_v39, 0.0 }
 0x142   :  { %v206_v41 = vpop.eup %205  ;;  %v83_v42 = vmul.f32 0.007874016, %v77_v40 }
 0x143   :  { %v85_v43 = vmul.f32 %v206_v41, %v78_v31 }
 0x144   :  { %215 = vrsqrt.f32 %v83_v42  ;;  %vm121_vm10 = vcmp.eq.f32.partialorder %v83_v42, inf  ;;  %v124_v12 = vand.u32 2147483648, %v83_v42  ;;  %vm123_vm11 = vcmp.eq.f32.partialorder %v83_v42, 0.0 }
 0x145   :  { %v87_v45 = vsel %vm86_vm0, %v78_v31, %v85_v43 }
 0x146   :  { %v208_v46 = vpop.eup %207  ;;  %v90_v47 = vsel %vm88_vm1, %v89_v44, %v87_v45 }
 0x147   :  { %v210_v48 = vpop.eup %209  ;;  %v126_v49 = vadd.f32 1e-06, %v90_v47  ;;  %v92_v50 = vmul.f32 %v208_v46, %v79_v34 }
 0x148   :  { %v99_v52 = vmul.f32 %v210_v48, %v80_v35 }
 0x149   :  { %217 = vrcp.f32 %v126_v49  ;;  %v94_v53 = vsel %vm93_vm2, %v79_v34, %v92_v50 }
 0x14a   :  { %v212_v55 = vpop.eup %211  ;;  %v97_v56 = vsel %vm95_vm3, %v96_v51, %v94_v53  ;;  %v101_v57 = vsel %vm100_vm4, %v80_v35, %v99_v52 }
 0x14b   :  { %v214_v58 = vpop.eup %213  ;;  %v127_v59 = vadd.f32 1e-06, %v97_v56  ;;  %v104_v60 = vsel %vm102_vm5, %v103_v54, %v101_v57  ;;  %v106_v61 = vmul.f32 %v212_v55, %v81_v38 }
 0x14c   :  { %v128_v62 = vadd.f32 1e-06, %v104_v60  ;;  %v113_v0 = vmul.f32 %v214_v58, %v82_v39 }
 0x14d   :  { %219 = vrcp.f32 %v127_v59  ;;  %v108_v1 = vsel %vm107_vm6, %v81_v38, %v106_v61 }
 0x14e   :  { %v216_v3 = vpop.eup %215  ;;  %221 = vrcp.f32 %v128_v62  ;;  %v111_v4 = vsel %vm109_vm7, %v110_v63, %v108_v1  ;;  %v115_v5 = vsel %vm114_vm8, %v82_v39, %v113_v0 }
 0x14f   :  { %v129_v6 = vadd.f32 1e-06, %v111_v4  ;;  %v118_v7 = vsel %vm116_vm9, %v117_v2, %v115_v5  ;;  %v120_v8 = vmul.f32 %v216_v3, %v83_v42 }
 0x150   :  { %v130_v9 = vadd.f32 1e-06, %v118_v7 }
 0x151   :  { %223 = vrcp.f32 %v129_v6  ;;  %v122_v13 = vsel %vm121_vm10, %v83_v42, %v120_v8 }
 0x152   :  { %225 = vrcp.f32 %v130_v9  ;;  %v125_v14 = vsel %vm123_vm11, %v124_v12, %v122_v13 }
 0x153   :  { %v218_v15 = vpop.eup %217  ;;  %v131_v16 = vadd.f32 1e-06, %v125_v14 }
 0x154   :  { %v146_v20 = vmul.f32 %v218_v15, %v316_v10 }
 0x155   :  { %227 = vrcp.f32 %v131_v16 }
 0x156   :  { %v158_v22 = vmul.f32 %v199_v19, %v146_v20 }
 0x157   :  { %v220_v23 = vpop.eup %219 }
 0x158   :  { %v222_v24 = vpop.eup %221  ;;  %v147_v27 = vmul.f32 %v220_v23, %v322_v17  ;;  %v170_v28 = vadd.f32 %v200_v21, %v158_v22 }
 0x159   :  { %v148_v29 = vmul.f32 %v222_v24, %v318_v11 }
 0x15a   :  { %v159_v30 = vmul.f32 %v199_v19, %v147_v27  ;;  %176 = vst [vmem:[#allocation5] sm:$0xff] %v170_v28 }
 0x15b   :  { %v224_v31 = vpop.eup %223  ;;  %v160_v32 = vmul.f32 %v199_v19, %v148_v29 }
 0x15c   :  { %v226_v33 = vpop.eup %225  ;;  %v149_v10 = vmul.f32 %v224_v31, %v324_v18  ;;  %v171_v34 = vadd.f32 %v200_v21, %v159_v30 }
 0x15d   :  { %v150_v35 = vmul.f32 %v226_v33, %v330_v25  ;;  %v172_v36 = vadd.f32 %v200_v21, %v160_v32 }
 0x15e   :  { %v161_v37 = vmul.f32 %v199_v19, %v149_v10  ;;  %177 = vst [vmem:[#allocation5 + $0x8] sm:$0xff] %v171_v34 }
 0x15f   :  { %v228_v38 = vpop.eup %227  ;;  %v162_v39 = vmul.f32 %v199_v19, %v150_v35  ;;  %178 = vst [vmem:[#allocation5 + $0x10] sm:$0xff] %v172_v36 }
 0x160   :  { %v151_v17 = vmul.f32 %v228_v38, %v332_v26  ;;  %v173_v40 = vadd.f32 %v200_v21, %v161_v37 }
 0x161   :  { %v174_v11 = vadd.f32 %v200_v21, %v162_v39 }
 0x162   :  { %v163_v41 = vmul.f32 %v199_v19, %v151_v17  ;;  %179 = vst [vmem:[#allocation5 + $0x18] sm:$0xff] %v173_v40 }
 0x163   :  { %180 = vst [vmem:[#allocation5 + $0x20] sm:$0xff] %v174_v11 }
 0x164   :  { %v175_v42 = vadd.f32 %v200_v21, %v163_v41 }
 0x166   :  { %181 = vst [vmem:[#allocation5 + $0x28] sm:$0xff] %v175_v42 }
 0x167   :  { %262 = shalt.err (!%p259_p12)
}
 0x168   :  { %s263_s5 = scalar_lea.hbm %s370_s3, 768 }
 0x169   :  { %p264_p13 = scmp.ne.s32.totalorder %s370_s3, %s263_s5  ;;  %p267_p0 = scmp.lt.u32.totalorder %s263_s5, %s370_s3 }
 0x16b   :  { %p269_p1 = pnand %p267_p0, %p264_p13 }
 0x16d   :  { %272 = shalt.err (!%p269_p1)
}
 0x16e   :  { %193 = dma.vmem_to_hbm [thread:$0]  %s188_s2, 768, %s370_s3, [#allocation4], %s278_s22, %s278_s22, %s279_s23  }
 0x16f   :  { %275 = dma.done.wait [#allocation4], 768  }
 0x170   :  { %276 = vsyncadd [#allocation4], 4294966528 }
 0x171   :  { %197 = vsyncpa [#allocation3], 1 }
 0x172   :  { %198 = vsyncpa [#allocation4], 1 }

</bundles_post_ra>
